<compile_context>
chip_gen: v7x
topology: tpu7x:2x2x1
jax: 0.10.0
libtpu: 0.0.40
codegen_flags: <defaults>
</compile_context>

<pallas_src>
import functools

import jax
import jax.numpy as jnp
from jax.experimental import pallas as pl
from jax.experimental.pallas import tpu as pltpu


def _round_up(a, b):
    return (a + b - 1) // b * b


def _conv_stats_kernel(p_ref, w_ref, y_ref, sum_ref, ssq_ref):
    """Per tile: conv matmul (bf16 -> f32) + per-image channel sum / sumsq.

    p_ref: (K, TS) bf16, w_ref: (Cout, K) bf16, y_ref: (Cout, TS) f32,
    sum_ref/ssq_ref: (Cout, 1) f32 accumulators (resident across the t axis).
    """
    y = jnp.dot(w_ref[...], p_ref[...], preferred_element_type=jnp.float32)
    y_ref[...] = y

    @pl.when(pl.program_id(1) == 0)
    def _():
        sum_ref[...] = jnp.zeros_like(sum_ref)
        ssq_ref[...] = jnp.zeros_like(ssq_ref)

    sum_ref[...] += jnp.sum(y, axis=-1, keepdims=True)
    ssq_ref[...] += jnp.sum(y * y, axis=-1, keepdims=True)


def _bn_leaky_kernel(y_ref, scale_ref, shift_ref, o_ref, *, slope):
    """Per tile: fused batch-norm affine + LeakyReLU (lane-dense, in place)."""
    y = y_ref[...] * scale_ref[...] + shift_ref[...]
    o_ref[...] = jnp.where(y >= 0, y, slope * y)


def con_bn_leaky_forward(x, w, b, gamma, beta, *, stride, padd, eps=1e-5,
                         slope=0.01, compute_dtype=jnp.bfloat16):
    """x: [N, Cin, H, W] (NCHW). Returns [N, Cout, OH, OW] float32."""
    del b  # per-channel conv bias cancels exactly under training-mode BatchNorm
    N, Cin, H, W = x.shape
    Cout, _, k, _ = w.shape
    OH = (H + 2 * padd - k) // stride + 1
    OW = (W + 2 * padd - k) // stride + 1
    OHW = OH * OW
    K = Cin * k * k
    M = N * OHW  # valid output pixels (for the BN statistics)

    # ---- tile sizing (lane-dense spatial tile, VMEM-aware) ------------------
    bpe = jnp.dtype(compute_dtype).itemsize
    TS = min(2048, _round_up(OHW, 128))
    # keep kernel-1's double-buffered footprint comfortably inside VMEM (v7x: 64 MiB)
    while TS > 128 and (2 * K * TS * bpe + 2 * Cout * TS * 4) > (24 << 20):
        TS -= 128
    OHWp = _round_up(OHW, TS)

    est_bytes = 2 * K * TS * bpe + Cout * K * bpe + 2 * Cout * TS * 4 + 4 * Cout * 4
    vmem_bytes = int(min(48 << 20, max(32 << 20, 4 * est_bytes)))

    # ---- glue: im2col directly in [N, K, OH*OW] layout (no big transpose) ---
    # TODO(synk): fuse im2col into kernel 1 (DMA padded input row-bands into
    # VMEM and build the k*k shifted views in-kernel) to avoid the k*k HBM
    # blow-up of the patches tensor for large feature maps.
    xp = jnp.pad(x, ((0, 0), (0, 0), (padd, padd), (padd, padd)))
    cols = []
    for i in range(k):
        for j in range(k):
            cols.append(
                jax.lax.slice(
                    xp,
                    (0, 0, i, j),
                    (N, Cin, i + stride * (OH - 1) + 1, j + stride * (OW - 1) + 1),
                    (1, 1, stride, stride),
                )
            )  # each: [N, Cin, OH, OW]
    patches = jnp.stack(cols, axis=2)                     # [N, Cin, k*k, OH, OW]
    patches = patches.reshape(N, K, OHW).astype(compute_dtype)
    patches = jnp.pad(patches, ((0, 0), (0, 0), (0, OHWp - OHW)))  # zero pads -> 0 stats

    wmat = w.reshape(Cout, K).astype(compute_dtype)       # [Cout, K]

    grid = (N, OHWp // TS)

    # ---- kernel 1: conv matmul + per-image per-channel sum / sumsq ----------
    # TODO(synk): for layers with large K = Cin*k*k, add a K grid axis with a
    # VMEM f32 accumulator (pl.when init / final writeback) so the patches tile
    # stays inside v7x's 64 MiB VMEM.
    conv_fn = pl.pallas_call(
        _conv_stats_kernel,
        out_shape=(
            jax.ShapeDtypeStruct((N, Cout, OHWp), jnp.float32),
            jax.ShapeDtypeStruct((N, Cout, 1), jnp.float32),
            jax.ShapeDtypeStruct((N, Cout, 1), jnp.float32),
        ),
        grid_spec=pltpu.PrefetchScalarGridSpec(
            num_scalar_prefetch=0,
            grid=grid,
            in_specs=[
                pl.BlockSpec((None, K, TS), lambda n, t: (n, 0, t)),
                pl.BlockSpec((Cout, K), lambda n, t: (0, 0)),
            ],
            out_specs=(
                pl.BlockSpec((None, Cout, TS), lambda n, t: (n, 0, t)),
                pl.BlockSpec((None, Cout, 1), lambda n, t: (n, 0, 0)),
                pl.BlockSpec((None, Cout, 1), lambda n, t: (n, 0, 0)),
            ),
        ),
        compiler_params=pltpu.CompilerParams(
            dimension_semantics=("parallel", "arbitrary"),
            vmem_limit_bytes=vmem_bytes,
        ),
    )
    y, csum, cssq = conv_fn(patches, wmat)

    # ---- glue: tiny per-channel math (training-mode BN, biased variance) ----
    # NOTE: single-pass E[y^2]-E[y]^2 can lose precision for poorly scaled
    # inputs; acceptable in f32 for typical conv activations.
    total_sum = jnp.sum(csum, axis=0)[:, 0]               # (Cout,)
    total_ssq = jnp.sum(cssq, axis=0)[:, 0]
    mean = total_sum / M
    var = total_ssq / M - mean * mean
    scale1d = gamma / jnp.sqrt(var + eps)
    shift1d = beta - mean * scale1d
    scale = scale1d.reshape(1, Cout, 1).astype(jnp.float32)
    shift = shift1d.reshape(1, Cout, 1).astype(jnp.float32)

    # ---- kernel 2: fused normalize + LeakyReLU (in place, lane-dense) -------
    bn_fn = pl.pallas_call(
        functools.partial(_bn_leaky_kernel, slope=slope),
        out_shape=jax.ShapeDtypeStruct((N, Cout, OHWp), jnp.float32),
        grid_spec=pltpu.PrefetchScalarGridSpec(
            num_scalar_prefetch=0,
            grid=grid,
            in_specs=[
                pl.BlockSpec((None, Cout, TS), lambda n, t: (n, 0, t)),
                pl.BlockSpec((None, Cout, 1), lambda n, t: (0, 0, 0)),
                pl.BlockSpec((None, Cout, 1), lambda n, t: (0, 0, 0)),
            ],
            out_specs=pl.BlockSpec((None, Cout, TS), lambda n, t: (n, 0, t)),
        ),
        compiler_params=pltpu.CompilerParams(
            dimension_semantics=("parallel", "parallel"),
            vmem_limit_bytes=vmem_bytes,
        ),
        input_output_aliases={0: 0},   # normalize y in place, save an HBM buffer
    )
    out = bn_fn(y, scale, shift)

    # Output is already (N, Cout, spatial): drop padding, reshape — no transpose.
    out = out[:, :, :OHW].reshape(N, Cout, OH, OW)
    return out


def _reference(x, w, b, gamma, beta, *, stride, padd, eps=1e-5, slope=0.01):
    conv = jax.lax.conv_general_dilated(
        x, w, (stride, stride), [(padd, padd), (padd, padd)],
        dimension_numbers=("NCHW", "OIHW", "NCHW"),
        precision=jax.lax.Precision.HIGHEST,
    ) + b.reshape(1, -1, 1, 1)
    mean = conv.mean(axis=(0, 2, 3), keepdims=True)
    var = conv.var(axis=(0, 2, 3), keepdims=True)  # biased, like PyTorch BN forward
    y = (conv - mean) / jnp.sqrt(var + eps)
    y = y * gamma.reshape(1, -1, 1, 1) + beta.reshape(1, -1, 1, 1)
    return jnp.where(y >= 0, y, slope * y)


if __name__ == "__main__":
    key = jax.random.PRNGKey(0)
    k1, k2, k3 = jax.random.split(key, 3)

    # in_ch=4, out_ch=8, k=3, stride=1, padd=1  (deterministic synthetic params)
    N, Cin, H, W = 2, 4, 16, 16
    Cout, ksz, stride, padd = 8, 3, 1, 1

    x = jax.random.normal(k1, (N, Cin, H, W), jnp.float32)
    w = jax.random.normal(k2, (Cout, Cin, ksz, ksz), jnp.float32) * 0.1
    b = jax.random.normal(k3, (Cout,), jnp.float32) * 0.1
    gamma = jnp.ones((Cout,), jnp.float32)   # nn.BatchNorm2d default weight init
    beta = jnp.zeros((Cout,), jnp.float32)   # nn.BatchNorm2d default bias init

    fwd = jax.jit(functools.partial(con_bn_leaky_forward, stride=stride, padd=padd))
    out = jax.block_until_ready(fwd(x, w, b, gamma, beta))

    # Reference uses the same bf16 rounding of x/w as the kernel's MXU path, so
    # the comparison isolates kernel/BN logic from the intentional bf16 cast.
    xq = x.astype(jnp.bfloat16).astype(jnp.float32)
    wq = w.astype(jnp.bfloat16).astype(jnp.float32)
    ref = _reference(xq, wq, b, gamma, beta, stride=stride, padd=padd)

    assert out.shape == (N, Cout, H, W)
    assert jnp.allclose(out, ref, atol=2e-3, rtol=2e-3), "mismatch vs reference"

    print("KERNEL_OK")
</pallas_src>

<mosaic_0001>
module attributes {stable_mosaic.version = 11 : i64} {
  func.func @_conv_stats_kernel(%arg0: i32, %arg1: i32, %arg2: memref<1x36x256xbf16, #tpu.memory_space<vmem>>, %arg3: memref<8x36xbf16, #tpu.memory_space<vmem>>, %arg4: memref<1x8x256xf32, #tpu.memory_space<vmem>>, %arg5: memref<1x8x1xf32, #tpu.memory_space<vmem>>, %arg6: memref<1x8x1xf32, #tpu.memory_space<vmem>>) attributes {dimension_semantics = [#tpu.dimension_semantics<parallel>, #tpu.dimension_semantics<arbitrary>], iteration_bounds = array<i64: 2, 1>, scalar_prefetch = 0 : i64, scratch_operands = 0 : i64, tpu.core_type = #tpu.core_type<tc>, window_params = [{transform_indices = @transform_0, window_bounds = array<i64: 1, 36, 256>}, {pipeline_mode = #tpu.pipeline_mode<synchronous>, transform_indices = @transform_1, window_bounds = array<i64: 8, 36>}, {transform_indices = @transform_2, window_bounds = array<i64: 1, 8, 256>}, {transform_indices = @transform_3, window_bounds = array<i64: 1, 8, 1>}, {transform_indices = @transform_4, window_bounds = array<i64: 1, 8, 1>}]} {
    %c0 = arith.constant 0 : index
    %c0_0 = arith.constant 0 : index
    %0 = vector.load %arg3[%c0, %c0_0] : memref<8x36xbf16, #tpu.memory_space<vmem>>, vector<8x36xbf16>
    %c0_1 = arith.constant 0 : index
    %c0_2 = arith.constant 0 : index
    %c0_3 = arith.constant 0 : index
    %1 = vector.load %arg2[%c0_1, %c0_2, %c0_3] : memref<1x36x256xbf16, #tpu.memory_space<vmem>>, vector<1x36x256xbf16>
    %2 = vector.shape_cast %1 : vector<1x36x256xbf16> to vector<36x256xbf16>
    %cst = arith.constant dense<0.000000e+00> : vector<8x256xf32>
    %3 = tpu.matmul %0, %2, %cst {dimension_numbers = #tpu.dot_dimension_numbers<[1], [0], [0], [1], [0, 0, 1, 1], [], []>} : vector<8x36xbf16>, vector<36x256xbf16>, vector<8x256xf32> -> vector<8x256xf32>
    %c0_4 = arith.constant 0 : index
    %c0_5 = arith.constant 0 : index
    %c0_6 = arith.constant 0 : index
    %4 = vector.load %arg4[%c0_4, %c0_5, %c0_6] : memref<1x8x256xf32, #tpu.memory_space<vmem>>, vector<1x8x256xf32>
    %5 = vector.shape_cast %4 : vector<1x8x256xf32> to vector<8x256xf32>
    %6 = vector.shape_cast %3 : vector<8x256xf32> to vector<1x8x256xf32>
    tpu.vector_store %arg4[%c0_4, %c0_5, %c0_6], %6 {strides = array<i32>} : memref<1x8x256xf32, #tpu.memory_space<vmem>>, vector<1x8x256xf32>,
    %c0_i32 = arith.constant 0 : i32
    %7 = arith.cmpi eq, %arg1, %c0_i32 : i32
    %8 = arith.extui %7 : i1 to i32
    %c0_i32_7 = arith.constant 0 : i32
    %9 = arith.cmpi ne, %8, %c0_i32_7 : i32
    scf.if %9 {
      %cst_22 = arith.constant 0.000000e+00 : f32
      %27 = vector.broadcast %cst_22 : f32 to vector<8x1xf32>
      %c0_23 = arith.constant 0 : index
      %c0_24 = arith.constant 0 : index
      %c0_25 = arith.constant 0 : index
      %28 = vector.load %arg5[%c0_23, %c0_24, %c0_25] : memref<1x8x1xf32, #tpu.memory_space<vmem>>, vector<1x8x1xf32>
      %29 = vector.shape_cast %28 : vector<1x8x1xf32> to vector<8x1xf32>
      %30 = vector.shape_cast %27 : vector<8x1xf32> to vector<1x8x1xf32>
      tpu.vector_store %arg5[%c0_23, %c0_24, %c0_25], %30 {strides = array<i32>} : memref<1x8x1xf32, #tpu.memory_space<vmem>>, vector<1x8x1xf32>,
      %cst_26 = arith.constant 0.000000e+00 : f32
      %31 = vector.broadcast %cst_26 : f32 to vector<8x1xf32>
      %c0_27 = arith.constant 0 : index
      %c0_28 = arith.constant 0 : index
      %c0_29 = arith.constant 0 : index
      %32 = vector.load %arg6[%c0_27, %c0_28, %c0_29] : memref<1x8x1xf32, #tpu.memory_space<vmem>>, vector<1x8x1xf32>
      %33 = vector.shape_cast %32 : vector<1x8x1xf32> to vector<8x1xf32>
      %34 = vector.shape_cast %31 : vector<8x1xf32> to vector<1x8x1xf32>
      tpu.vector_store %arg6[%c0_27, %c0_28, %c0_29], %34 {strides = array<i32>} : memref<1x8x1xf32, #tpu.memory_space<vmem>>, vector<1x8x1xf32>,
    } else {
    }
    %c0_8 = arith.constant 0 : index
    %c0_9 = arith.constant 0 : index
    %c0_10 = arith.constant 0 : index
    %10 = vector.load %arg5[%c0_8, %c0_9, %c0_10] : memref<1x8x1xf32, #tpu.memory_space<vmem>>, vector<1x8x1xf32>
    %11 = vector.shape_cast %10 : vector<1x8x1xf32> to vector<8x1xf32>
    %cst_11 = arith.constant dense<0.000000e+00> : vector<8xf32>
    %12 = vector.multi_reduction <add>, %3, %cst_11 [1] : vector<8x256xf32> to vector<8xf32>
    %13 = vector.shape_cast %12 : vector<8xf32> to vector<8x1xf32>
    %14 = arith.addf %11, %13 : vector<8x1xf32>
    %c0_12 = arith.constant 0 : index
    %c0_13 = arith.constant 0 : index
    %c0_14 = arith.constant 0 : index
    %15 = vector.load %arg5[%c0_12, %c0_13, %c0_14] : memref<1x8x1xf32, #tpu.memory_space<vmem>>, vector<1x8x1xf32>
    %16 = vector.shape_cast %15 : vector<1x8x1xf32> to vector<8x1xf32>
    %17 = vector.shape_cast %14 : vector<8x1xf32> to vector<1x8x1xf32>
    tpu.vector_store %arg5[%c0_12, %c0_13, %c0_14], %17 {strides = array<i32>} : memref<1x8x1xf32, #tpu.memory_space<vmem>>, vector<1x8x1xf32>,
    %c0_15 = arith.constant 0 : index
    %c0_16 = arith.constant 0 : index
    %c0_17 = arith.constant 0 : index
    %18 = vector.load %arg6[%c0_15, %c0_16, %c0_17] : memref<1x8x1xf32, #tpu.memory_space<vmem>>, vector<1x8x1xf32>
    %19 = vector.shape_cast %18 : vector<1x8x1xf32> to vector<8x1xf32>
    %20 = arith.mulf %3, %3 : vector<8x256xf32>
    %cst_18 = arith.constant dense<0.000000e+00> : vector<8xf32>
    %21 = vector.multi_reduction <add>, %20, %cst_18 [1] : vector<8x256xf32> to vector<8xf32>
    %22 = vector.shape_cast %21 : vector<8xf32> to vector<8x1xf32>
    %23 = arith.addf %19, %22 : vector<8x1xf32>
    %c0_19 = arith.constant 0 : index
    %c0_20 = arith.constant 0 : index
    %c0_21 = arith.constant 0 : index
    %24 = vector.load %arg6[%c0_19, %c0_20, %c0_21] : memref<1x8x1xf32, #tpu.memory_space<vmem>>, vector<1x8x1xf32>
    %25 = vector.shape_cast %24 : vector<1x8x1xf32> to vector<8x1xf32>
    %26 = vector.shape_cast %23 : vector<8x1xf32> to vector<1x8x1xf32>
    tpu.vector_store %arg6[%c0_19, %c0_20, %c0_21], %26 {strides = array<i32>} : memref<1x8x1xf32, #tpu.memory_space<vmem>>, vector<1x8x1xf32>,
    return
  }
  func.func @transform_0(%arg0: i32, %arg1: i32) -> (i32, i32, i32) {
    %c0_i32 = arith.constant 0 : i32
    %c0_i32_0 = arith.constant 0 : i32
    return %arg0, %c0_i32, %arg1 : i32, i32, i32
  }
  func.func @transform_1(%arg0: i32, %arg1: i32) -> (i32, i32) {
    %c0_i32 = arith.constant 0 : i32
    %c0_i32_0 = arith.constant 0 : i32
    %c0_i32_1 = arith.constant 0 : i32
    return %c0_i32, %c0_i32_0 : i32, i32
  }
  func.func @transform_2(%arg0: i32, %arg1: i32) -> (i32, i32, i32) {
    %c0_i32 = arith.constant 0 : i32
    %c0_i32_0 = arith.constant 0 : i32
    return %arg0, %c0_i32, %arg1 : i32, i32, i32
  }
  func.func @transform_3(%arg0: i32, %arg1: i32) -> (i32, i32, i32) {
    %c0_i32 = arith.constant 0 : i32
    %c0_i32_0 = arith.constant 0 : i32
    %c0_i32_1 = arith.constant 0 : i32
    return %arg0, %c0_i32, %c0_i32_0 : i32, i32, i32
  }
  func.func @transform_4(%arg0: i32, %arg1: i32) -> (i32, i32, i32) {
    %c0_i32 = arith.constant 0 : i32
    %c0_i32_0 = arith.constant 0 : i32
    %c0_i32_1 = arith.constant 0 : i32
    return %arg0, %c0_i32, %c0_i32_0 : i32, i32, i32
  }
}

module attributes {stable_mosaic.version = 11 : i64} {
  func.func @_bn_leaky_kernel(%arg0: i32, %arg1: i32, %arg2: memref<1x8x256xf32, #tpu.memory_space<vmem>>, %arg3: memref<1x8x1xf32, #tpu.memory_space<vmem>>, %arg4: memref<1x8x1xf32, #tpu.memory_space<vmem>>, %arg5: memref<1x8x256xf32, #tpu.memory_space<vmem>>) attributes {dimension_semantics = [#tpu.dimension_semantics<parallel>, #tpu.dimension_semantics<parallel>], iteration_bounds = array<i64: 2, 1>, scalar_prefetch = 0 : i64, scratch_operands = 0 : i64, tpu.core_type = #tpu.core_type<tc>, window_params = [{transform_indices = @transform_0, window_bounds = array<i64: 1, 8, 256>}, {pipeline_mode = #tpu.pipeline_mode<synchronous>, transform_indices = @transform_1, window_bounds = array<i64: 1, 8, 1>}, {pipeline_mode = #tpu.pipeline_mode<synchronous>, transform_indices = @transform_2, window_bounds = array<i64: 1, 8, 1>}, {transform_indices = @transform_3, window_bounds = array<i64: 1, 8, 256>}]} {
    %c0 = arith.constant 0 : index
    %c0_0 = arith.constant 0 : index
    %c0_1 = arith.constant 0 : index
    %0 = vector.load %arg2[%c0, %c0_0, %c0_1] : memref<1x8x256xf32, #tpu.memory_space<vmem>>, vector<1x8x256xf32>
    %1 = vector.shape_cast %0 : vector<1x8x256xf32> to vector<8x256xf32>
    %c0_2 = arith.constant 0 : index
    %c0_3 = arith.constant 0 : index
    %c0_4 = arith.constant 0 : index
    %2 = vector.load %arg3[%c0_2, %c0_3, %c0_4] : memref<1x8x1xf32, #tpu.memory_space<vmem>>, vector<1x8x1xf32>
    %3 = vector.shape_cast %2 : vector<1x8x1xf32> to vector<8x1xf32>
    %4 = vector.broadcast %3 : vector<8x1xf32> to vector<8x256xf32>
    %5 = arith.mulf %1, %4 : vector<8x256xf32>
    %c0_5 = arith.constant 0 : index
    %c0_6 = arith.constant 0 : index
    %c0_7 = arith.constant 0 : index
    %6 = vector.load %arg4[%c0_5, %c0_6, %c0_7] : memref<1x8x1xf32, #tpu.memory_space<vmem>>, vector<1x8x1xf32>
    %7 = vector.shape_cast %6 : vector<1x8x1xf32> to vector<8x1xf32>
    %8 = vector.broadcast %7 : vector<8x1xf32> to vector<8x256xf32>
    %9 = arith.addf %5, %8 : vector<8x256xf32>
    %cst = arith.constant 0.000000e+00 : f32
    %10 = vector.broadcast %cst : f32 to vector<8x256xf32>
    %11 = arith.cmpf oge, %9, %10 : vector<8x256xf32>
    %cst_8 = arith.constant 0.00999999977 : f32
    %12 = vector.broadcast %cst_8 : f32 to vector<8x256xf32>
    %13 = arith.mulf %12, %9 : vector<8x256xf32>
    %14 = arith.select %11, %9, %13 : vector<8x256xi1>, vector<8x256xf32>
    %c0_9 = arith.constant 0 : index
    %c0_10 = arith.constant 0 : index
    %c0_11 = arith.constant 0 : index
    %15 = vector.load %arg5[%c0_9, %c0_10, %c0_11] : memref<1x8x256xf32, #tpu.memory_space<vmem>>, vector<1x8x256xf32>
    %16 = vector.shape_cast %15 : vector<1x8x256xf32> to vector<8x256xf32>
    %17 = vector.shape_cast %14 : vector<8x256xf32> to vector<1x8x256xf32>
    tpu.vector_store %arg5[%c0_9, %c0_10, %c0_11], %17 {strides = array<i32>} : memref<1x8x256xf32, #tpu.memory_space<vmem>>, vector<1x8x256xf32>,
    return
  }
  func.func @transform_0(%arg0: i32, %arg1: i32) -> (i32, i32, i32) {
    %c0_i32 = arith.constant 0 : i32
    %c0_i32_0 = arith.constant 0 : i32
    return %arg0, %c0_i32, %arg1 : i32, i32, i32
  }
  func.func @transform_1(%arg0: i32, %arg1: i32) -> (i32, i32, i32) {
    %c0_i32 = arith.constant 0 : i32
    %c0_i32_0 = arith.constant 0 : i32
    %c0_i32_1 = arith.constant 0 : i32
    %c0_i32_2 = arith.constant 0 : i32
    return %c0_i32, %c0_i32_0, %c0_i32_1 : i32, i32, i32
  }
  func.func @transform_2(%arg0: i32, %arg1: i32) -> (i32, i32, i32) {
    %c0_i32 = arith.constant 0 : i32
    %c0_i32_0 = arith.constant 0 : i32
    %c0_i32_1 = arith.constant 0 : i32
    %c0_i32_2 = arith.constant 0 : i32
    return %c0_i32, %c0_i32_0, %c0_i32_1 : i32, i32, i32
  }
  func.func @transform_3(%arg0: i32, %arg1: i32) -> (i32, i32, i32) {
    %c0_i32 = arith.constant 0 : i32
    %c0_i32_0 = arith.constant 0 : i32
    return %arg0, %c0_i32, %arg1 : i32, i32, i32
  }
}

</mosaic_0001>

<bundles_post_ra>
// kernel: con_bn_leaky_forward.3
= control target key start
LH: loop header
LB: loop body
LE: loop exit
PB: predicated region body
PF: predicated region fallthrough
CT: control target
= control target key end

     0   :  { %s407_s12 = smov 0   ;;  %s409_s13 = smov 0   ;;  %s446_s0 = inlined_call_operand.vmem [shape: f32[2,8,256], index: 0, kind: input, shape index: {}, may-alias: {0,3}]   ;;  %s447_s1 = inlined_call_operand.vmem [shape: f32[1,8,1], index: 1, kind: input, shape index: {}]   ;;  %s448_s2 = inlined_call_operand.vmem [shape: f32[1,8,1], index: 2, kind: input, shape index: {}]   ;;  %s449_s3 = inlined_call_operand.vmem [shape: f32[2,8,256], index: 3, kind: output, shape index: {}, may-alias: {0,3}]  }
   0x1   :  { %s411_s14 = smov 0  }
   0x2 LB: > { %s25_s15 = sadd.s32 1, %s380_s13  ;;  %p327_p0 = scmp.ge.s32.totalorder %s384_s14, 1  ;;  %s384_s14 = sphi %s411_s14, %s13_s14   ;;  %s380_s13 = sphi %s409_s13, %s451_s13   ;;  %s376_s12 = sphi %s407_s12, %s450_s12  }
   0x3   : > { %p27_p1 = scmp.ge.s32.totalorder %s25_s15, 2  ;;  %p158_p2 = scmp.lt.s32.totalorder %s384_s14, 3 }
   0x5   : > { %s453_s15 = smov (%p27_p1, %s25_s15), 0  ;;  %p159_p3 = pnand %p327_p0, %p158_p2 }
   0x6   : > { %v212_v0 = vld [vmem:[%s447_s1] sm:$0xff] (!%p159_p3)  ;;  %v386_v1 = vmov (!%p159_p3), 0   ;;  %p191_p4 = scmp.lt.s32.totalorder (!%p159_p3), %s376_s12, 1 }
   0x7   : > { %162 = sbr.rel (%p159_p3) target bundleno = 146 (0x92), region = 32  ;;  %361 = vset.pattern.permute.xlu0 (!%p159_p3), %v386_v1  ;;  %v220_v2 = vld [vmem:[%s448_s2] sm:$0xff] (!%p159_p3) }
   0x8   : > { %215 = vperm.xlu0 (!%p159_p3), %361, %v212_v0  }
   0xc   : > { %223 = vperm.xlu0 (!%p159_p3), %361, %v220_v2  }
   0xe   : > { %s455_s12 = smov (!%p191_p4, %s376_s12), 1 }
   0xf   : > { %s334_s20 = sshll.u32 %s455_s12, 4 }
  0x10   : > { %s198_s23 = scalar_lea.vmem %s446_s0, %s334_s20  ;;  %s208_s26 = scalar_lea.vmem %s449_s3, %s334_s20 }
  0x11   : > { %v210_v4 = vld [vmem:[%s198_s23] sm:$0xff]  ;;  %v211_v5 = vld [vmem:[%s198_s23 + $0x8] sm:$0xff] }
  0x87   : > { %v216_v3 = vpop.permute.xlu0 %215 }
  0x88   : > { %v218_v6 = vmul.f32 %v216_v3, %v210_v4  ;;  %v219_v7 = vmul.f32 %v216_v3, %v211_v5 }
  0x8b   : > { %v224_v8 = vpop.permute.xlu0 %223 }
  0x8c   : > { %v226_v9 = vadd.f32 %v224_v8, %v218_v6  ;;  %v227_v10 = vadd.f32 %v224_v8, %v219_v7 }
  0x8e   : > { %vm228_vm0 = vcmp.ge.f32.partialorder %v226_v9, 0.0  ;;  %vm229_vm1 = vcmp.ge.f32.partialorder %v227_v10, 0.0  ;;  %v230_v11 = vmul.f32 0.01, %v226_v9  ;;  %v231_v12 = vmul.f32 0.01, %v227_v10 }
  0x90   : > { %v232_v13 = vsel %vm228_vm0, %v226_v9, %v230_v11  ;;  %v233_v14 = vsel %vm229_vm1, %v227_v10, %v231_v12 }
  0x91   : > { %234 = vst [vmem:[%s208_s26] sm:$0xff] %v232_v13  ;;  %235 = vst [vmem:[%s208_s26 + $0x8] sm:$0xff] %v233_v14 }
  0x92 PF: > { %s13_s14 = sadd.s32 1, %s384_s14   ;;  %s450_s12 = smov %s380_s13 }
  0x93   : > { %p10_p5 = scmp.ge.s32.totalorder %s13_s14, 4   ;;  %s451_s13 = smov %s453_s15 }
  0x95   :  { %12 = sbr.rel (!%p10_p5) target bundleno = 2 (0x2), region = 62 }

// kernel: con_bn_leaky_forward.2
= control target key start
LH: loop header
LB: loop body
LE: loop exit
PB: predicated region body
PF: predicated region fallthrough
CT: control target
= control target key end

     0   :  { %s622_s15 = smov 0   ;;  %s624_s16 = smov 0   ;;  %s673_s0 = inlined_call_operand.vmem [shape: bf16[2,36,256], index: 0, kind: input, shape index: {}]   ;;  %s674_s1 = inlined_call_operand.vmem [shape: bf16[8,36], index: 1, kind: input, shape index: {}]   ;;  %s675_s2 = inlined_call_operand.vmem [shape: f32[2,8,256], index: 2, kind: output, shape index: {0}]   ;;  %s676_s3 = inlined_call_operand.vmem [shape: f32[2,8,1], index: 3, kind: output, shape index: {1}]   ;;  %s677_s4 = inlined_call_operand.vmem [shape: f32[2,8,1], index: 4, kind: output, shape index: {2}]  }
   0x1   :  { %s626_s17 = smov 0  }
   0x2 LB: > { %s27_s18 = sadd.s32 1, %s589_s16  ;;  %p519_p0 = scmp.ge.s32.totalorder %s593_s17, 1  ;;  %s593_s17 = sphi %s626_s17, %s15_s17   ;;  %s589_s16 = sphi %s624_s16, %s679_s16   ;;  %s585_s15 = sphi %s622_s15, %s678_s15  }
   0x3   : > { %p29_p1 = scmp.ge.s32.totalorder %s27_s18, 2  ;;  %p188_p2 = scmp.lt.s32.totalorder %s593_s17, 3 }
   0x5   : > { %s681_s18 = smov (%p29_p1, %s27_s18), 0  ;;  %p189_p3 = pnand %p519_p0, %p188_p2 }
   0x6   : > { %p231_p4 = scmp.lt.s32.totalorder (!%p189_p3), %s585_s15, 1  ;;  %v595_v0 = vmov (!%p189_p3), 0   ;;  %vm294_vm0 = vcmask (!%p189_p3), 1041408   ;;  %v259_v9 = vld [vmem:[%s674_s1] sm:$0xf] (!%p189_p3)  ;;  %vm290_vm1 = vcmask (!%p189_p3), 293888  }
   0x7   : > { %192 = sbr.rel (%p189_p3) target bundleno = 395 (0x18b), region = 28  ;;  %333 = vmatprep.mubr.bf16.mxu0 (!%p189_p3), %v595_v0  ;;  %vm348_vm2 = vcmask (!%p189_p3), 7168   ;;  %v596_v10 = vmov (!%p189_p3), 0.0  }
   0xe   : > { %s683_s15 = smov (!%p231_p4, %s585_s15), 1 }
   0xf   : > { %s536_s19 = smul.u32 40, %s683_s15  ;;  %s523_s25 = sshll.u32 %s683_s15, 3 }
  0x10   : > { %s253_s28 = scalar_lea.vmem %s676_s3, %s523_s25  ;;  %s535_s29 = sshll.u32 %s683_s15, 4 }
  0x11   : > { %s238_s22 = scalar_lea.vmem %s673_s0, %s536_s19  ;;  %349 = vst.msk [vmem:[%s253_s28] sm:$0xff] %vm348_vm2, %v596_v10  ;;  %s248_s6 = scalar_lea.vmem %s675_s2, %s535_s29 }
  0x12   : > { %v563_v1 = vld [vmem:[%s238_s22 + $0x4] ss:$8 sps:$4 sm:$0xff]   ;;  %v565_v2 = vld [vmem:[%s238_s22] ss:$8 sps:$4 sm:$0xff]   ;;  %v566_v3 = vld [vmem:[%s238_s22 + $0x14] ss:$8 sps:$4 sm:$0xff]   ;;  %s257_s9 = scalar_lea.vmem %s677_s4, %s523_s25 }
  0x13   : > { %301 = vmatprep.subr.bf16.mxu0 %v563_v1  ;;  %v264_v4 = vld [vmem:[%s238_s22 + $0x20] sm:$0x33]  ;;  %v568_v5 = vld [vmem:[%s238_s22 + $0x10] ss:$8 sps:$4 sm:$0xff]   ;;  %350 = vst.msk [vmem:[%s257_s9] sm:$0xff] %vm348_vm2, %v596_v10 }
  0x14   : > { %302 = vmatpush1.bf16.msra.mxu0 %v565_v2  ;;  %v530_v6 = vcombine.high %v264_v4, %v264_v4  ;;  %v529_v7 = vcombine.low %v264_v4, %v264_v4 }
  0x15   : > { %303 = vmatprep.subr.bf16.mxu0 %v566_v3 }
  0x16   : > { %v296_v8 = vsel %vm294_vm0, %v529_v7, 0 }
  0x18   : > { %304 = vmatpush1.bf16.msra.mxu0 %v568_v5  ;;  %v351_v19 = vld [vmem:[%s253_s28] sm:$0xff] }
  0x19   : > { %531 = vmatprep.subr.msk.bf16.mxu0 %vm294_vm0, %v530_v6 }
  0x1a   : > { %v358_v22 = vld [vmem:[%s257_s9] sm:$0xff] }
  0x1c   : > { %306 = vmatpush1.bf16.msra.mxu0 %v296_v8 }
  0x1f   : > { %532 = vmatmul.mubr.msk.bf16.vlgmr.msra.gmra.mrb[0].mxu0 %vm290_vm1, %v259_v9 }
  0xf2   : > { %v335_v11 = vpop.f32.mrb[0].mxu0 }
  0xf3   : > { %342 = vst [vmem:[%s248_s6] sm:$0xff] %v335_v11  ;;  %v337_v12 = vpop.f32.mrb[1].mxu0  ;;  %v359_v13 = vmul.f32 %v335_v11, %v335_v11 }
  0xf4   : > { %343 = vst [vmem:[%s248_s6 + $0x8] sm:$0xff] %v337_v12  ;;  %v339_v14 = vpop.f32.mrb[2].mxu0  ;;  %v352_v15 = vadd.f32 %v337_v12, %v335_v11  ;;  %v360_v16 = vmul.f32 %v337_v12, %v337_v12 }
  0xf5   : > { %v340_v17 = vpop.f32.mrb[3].mxu0 }
  0xf6   : > { %353 = vadd.xlane.f32.xlu0 %v352_v15  ;;  %v361_v18 = vadd.f32 %v360_v16, %v359_v13 }
  0xfa   : > { %362 = vadd.xlane.f32.xlu0 %v361_v18 }
 0x183   : > { %v354_v20 = vpop.xlane.xlu0 %353 }
 0x184   : > { %v355_v21 = vadd.f32 %v354_v20, %v351_v19 }
 0x186   : > { %357 = vst.msk [vmem:[%s253_s28] sm:$0xff] %vm348_vm2, %v355_v21 }
 0x187   : > { %v363_v23 = vpop.xlane.xlu0 %362 }
 0x188   : > { %v364_v24 = vadd.f32 %v363_v23, %v358_v22 }
 0x18a   : > { %365 = vst.msk [vmem:[%s257_s9] sm:$0xff] %vm348_vm2, %v364_v24 }
 0x18b PF: > { %s15_s17 = sadd.s32 1, %s593_s17   ;;  %s678_s15 = smov %s589_s16 }
 0x18c   : > { %p12_p5 = scmp.ge.s32.totalorder %s15_s17, 4   ;;  %s679_s16 = smov %s681_s18 }
 0x18e   :  { %14 = sbr.rel (!%p12_p5) target bundleno = 2 (0x2), region = 86 }

</bundles_post_ra>
